<compile_context>
chip_gen: v5e
topology: v5e:2x2
jax: 0.10.0
libtpu: 0.0.40
codegen_flags: <defaults>
</compile_context>

<pallas_src>
import jax
import jax.numpy as jnp
from jax.experimental import pallas as pl
from jax.experimental.pallas import tpu as pltpu


def _dice_bce_kernel(pred_ref, true_ref, part_ref):
    """Grid = (C, S, K): C channels (parallel), S reduction splits (parallel),
    K inner reduction tiles (arbitrary).

    pred_ref, true_ref : VMEM (B, TS, 128)  logits / {0,1} targets
    part_ref           : VMEM (4, 128) f32  lane-wise partial sums for this
                         (channel, split): [inter, sum_p, sum_t, bce_sum]
    """
    k = pl.program_id(2)

    @pl.when(k == 0)
    def _init():
        part_ref[...] = jnp.zeros_like(part_ref)

    x = pred_ref[...].astype(jnp.float32)   # logits
    t = true_ref[...].astype(jnp.float32)   # targets in {0,1}

    # One exp(-|x|) feeds both the sigmoid and the numerically-stable BCE term:
    #   sigmoid(x) = where(x>=0, 1, e) / (1 + e),   e = exp(-|x|)
    #   bce(x, t)  = max(x, 0) - x*t + log1p(e)
    e = jnp.exp(-jnp.abs(x))
    p = jnp.where(x >= 0.0, 1.0, e) / (1.0 + e)          # exact divide (free: mem-bound)
    bce = jnp.maximum(x, 0.0) - x * t + jnp.log1p(e)

    # Keep the lane axis: only VALU vreg-adds + one small sublane fold per
    # quantity; the cross-lane reduction happens once, in the wrapper.
    part_ref[...] += jnp.concatenate(
        [
            jnp.sum(p * t, axis=(0, 1))[None, :],
            jnp.sum(p, axis=(0, 1))[None, :],
            jnp.sum(t, axis=(0, 1))[None, :],
            jnp.sum(bce, axis=(0, 1))[None, :],
        ],
        axis=0,
    )  # (4, 128)


def _round_up(x, m):
    return -(-x // m) * m


def _largest_div8_tile(rows, max_ts):
    """Largest multiple-of-8 divisor of `rows` that is <= max_ts (0 if none)."""
    best = 0
    for cand in range(8, min(rows, max_ts) + 1, 8):
        if rows % cand == 0:
            best = cand
    return best


def _plan_tiling(B, C, L, itemsize, budget_bytes=4 << 20):
    """Pick (L_pad, S, KS, TS) such that:
       L_pad % 128 == 0,  L_pad // 128 == S * KS * TS,
       TS is a multiple of 8 (or equals the full row count),
       and one input block (B, TS, 128) stays under ~budget_bytes."""
    max_ts = max(8, (budget_bytes // (B * 128 * itemsize)) // 8 * 8)
    LS = _round_up(L, 128) // 128            # rows of 128 lanes (lane padding only)
    pad_needed = (L % 128) != 0
    want_split = C < 2                       # v7x: 2 TCs need >= 2 parallel blocks

    def try_plan(rows_total, S):
        if rows_total % S:
            return None
        rows = rows_total // S
        ts = _largest_div8_tile(rows, max_ts)
        if ts:
            return (rows_total * 128, S, rows // ts, ts)
        if S == 1 and rows <= max_ts:        # small input: one full-rows block
            return (rows_total * 128, 1, 1, rows)
        return None

    plans = []
    if want_split:
        plans.append(try_plan(LS, 2))                          # split, no extra pad
    if want_split and pad_needed:                              # pad happens anyway
        plans.append(try_plan(_round_up(LS, 16), 2))
    plans.append(try_plan(LS, 1))                              # no extra pad
    if want_split:
        plans.append(try_plan(_round_up(LS, 16), 2))           # pad rows, keep split
    plans.append(try_plan(_round_up(LS, 8), 1))                # pad rows to 8 (always works)
    for plan in plans:
        if plan is not None:
            return plan
    # TODO(synk): tile the batch axis as well if a single (B, 8, 128) block
    # already exceeds the budget (not hit for realistic shapes).
    return (LS * 128, 1, 1, LS)


def dice_bce_loss(y_pred, y_true, *, smooth=1.0, bce_weight=0.5):
    """Returns (total_loss, dice_scores) matching DiceBCELoss.forward.

    total_loss  : scalar = mean_c( dice_loss_c + bce_weight * bce_loss_c )
    dice_scores : (C,) array, dice_scores[c] = 1 - dice_loss_c

    Inputs are consumed in their original NCHW layout / dtype.  Pass bf16
    logits / bf16 (or int8 {0,1}) targets to halve HBM traffic on the
    memory-bound generations; accumulation is f32 inside the kernel.
    """
    B, C, H, W = y_pred.shape
    L = H * W
    n_valid = float(B * L)
    itemsize = max(jnp.dtype(y_pred.dtype).itemsize,
                   jnp.dtype(y_true.dtype).itemsize)

    L_pad, S, KS, TS = _plan_tiling(B, C, L, itemsize)
    LS = L_pad // 128

    xp = y_pred.reshape(B, C, L)
    tp = y_true.reshape(B, C, L)
    if L_pad != L:
        # Sentinel padding: sigmoid(-1e4) == 0 and log1p(exp(-1e4)) == 0 exactly,
        # target 0 -> padded elements contribute exactly nothing to any sum.
        # TODO(synk): a masked tail tile would avoid this extra copy.
        pad = [(0, 0), (0, 0), (0, L_pad - L)]
        xp = jnp.pad(xp, pad, constant_values=-1e4)
        tp = jnp.pad(tp, pad, constant_values=0)
    xp = xp.reshape(B, C, LS, 128)   # metadata-only when no padding was needed
    tp = tp.reshape(B, C, LS, 128)

    in_spec = pl.BlockSpec((B, None, TS, 128),
                           lambda c, s, k: (0, c, s * KS + k, 0))
    out_spec = pl.BlockSpec((None, None, 4, 128),
                            lambda c, s, k: (c, s, 0, 0))

    total_elems = B * C * L
    cost = pl.CostEstimate(flops=14 * total_elems,
                           transcendentals=3 * total_elems,
                           bytes_accessed=2 * total_elems * itemsize)

    partials = pl.pallas_call(
        _dice_bce_kernel,
        out_shape=jax.ShapeDtypeStruct((C, S, 4, 128), jnp.float32),
        grid=(C, S, KS),
        in_specs=[in_spec, in_spec],
        out_specs=out_spec,
        compiler_params=pltpu.CompilerParams(
            dimension_semantics=("parallel", "parallel", "arbitrary"),
            vmem_limit_bytes=32 << 20),
        cost_estimate=cost,
    )(xp, tp)

    # Tiny epilogue: combine split partials + cross-lane reduce (C*S*4*128 elems).
    sums = jnp.sum(partials, axis=(1, 3))                  # (C, 4)
    inter, sum_p, sum_t, bce_sum = (sums[:, 0], sums[:, 1], sums[:, 2], sums[:, 3])
    dice = (2.0 * inter + smooth) / (sum_p + sum_t + smooth)
    dice_loss_c = 1.0 - dice
    bce_c = bce_sum / n_valid
    total_loss = jnp.mean(dice_loss_c + bce_weight * bce_c)
    dice_scores = dice                                     # == 1 - dice_loss_c
    return total_loss, dice_scores


def _reference(y_pred, y_true, smooth=1.0, bce_weight=0.5):
    """Pure-JAX reference of the same math."""
    x = y_pred.astype(jnp.float32)
    t = y_true.astype(jnp.float32)
    p = jax.nn.sigmoid(x)
    inter = jnp.sum(p * t, axis=(0, 2, 3))
    sum_p = jnp.sum(p, axis=(0, 2, 3))
    sum_t = jnp.sum(t, axis=(0, 2, 3))
    dice = (2.0 * inter + smooth) / (sum_p + sum_t + smooth)
    dice_loss = 1.0 - dice
    bce = jnp.mean(jnp.maximum(x, 0.0) - x * t + jnp.log1p(jnp.exp(-jnp.abs(x))),
                   axis=(0, 2, 3))
    total = jnp.mean(dice_loss + bce_weight * bce)
    return total, dice


if __name__ == "__main__":
    key = jax.random.PRNGKey(0)
    k1, k2 = jax.random.split(key)

    B, C, H, W = 2, 4, 16, 16
    y_pred = jax.random.normal(k1, (B, C, H, W), dtype=jnp.float32)           # logits
    y_true = jax.random.bernoulli(k2, 0.4, (B, C, H, W)).astype(jnp.float32)  # {0,1}

    total_loss, dice_scores = dice_bce_loss(y_pred, y_true,
                                            smooth=1.0, bce_weight=0.5)
    total_loss = jax.block_until_ready(total_loss)
    dice_scores = jax.block_until_ready(dice_scores)

    ref_loss, ref_scores = _reference(y_pred, y_true)
    assert jnp.allclose(total_loss, ref_loss, atol=1e-5, rtol=1e-5), \
        (total_loss, ref_loss)
    assert jnp.allclose(dice_scores, ref_scores, atol=1e-5, rtol=1e-5), \
        (dice_scores, ref_scores)

    print("KERNEL_OK")
</pallas_src>

<mosaic_0001>
module attributes {stable_mosaic.version = 11 : i64} {
  func.func @_dice_bce_kernel(%arg0: i32, %arg1: i32, %arg2: i32, %arg3: memref<2x1x2x128xf32, #tpu.memory_space<vmem>>, %arg4: memref<2x1x2x128xf32, #tpu.memory_space<vmem>>, %arg5: memref<1x1x4x128xf32, #tpu.memory_space<vmem>>) attributes {dimension_semantics = [#tpu.dimension_semantics<parallel>, #tpu.dimension_semantics<parallel>, #tpu.dimension_semantics<arbitrary>], iteration_bounds = array<i64: 4, 1, 1>, scalar_prefetch = 0 : i64, scratch_operands = 0 : i64, tpu.core_type = #tpu.core_type<tc>, window_params = [{transform_indices = @transform_0, window_bounds = array<i64: 2, 1, 2, 128>}, {transform_indices = @transform_1, window_bounds = array<i64: 2, 1, 2, 128>}, {transform_indices = @transform_2, window_bounds = array<i64: 1, 1, 4, 128>}]} {
    %c0_i32 = arith.constant 0 : i32
    %0 = arith.cmpi eq, %arg2, %c0_i32 : i32
    %1 = arith.extui %0 : i1 to i32
    %c0_i32_0 = arith.constant 0 : i32
    %2 = arith.cmpi ne, %1, %c0_i32_0 : i32
    scf.if %2 {
      %cst_24 = arith.constant 0.000000e+00 : f32
      %40 = vector.broadcast %cst_24 : f32 to vector<4x128xf32>
      %c0_25 = arith.constant 0 : index
      %c0_26 = arith.constant 0 : index
      %c0_27 = arith.constant 0 : index
      %c0_28 = arith.constant 0 : index
      %41 = vector.load %arg5[%c0_25, %c0_26, %c0_27, %c0_28] : memref<1x1x4x128xf32, #tpu.memory_space<vmem>>, vector<1x1x4x128xf32>
      %42 = vector.shape_cast %41 : vector<1x1x4x128xf32> to vector<4x128xf32>
      %43 = vector.shape_cast %40 : vector<4x128xf32> to vector<1x1x4x128xf32>
      tpu.vector_store %arg5[%c0_25, %c0_26, %c0_27, %c0_28], %43 {strides = array<i32>} : memref<1x1x4x128xf32, #tpu.memory_space<vmem>>, vector<1x1x4x128xf32>,
    } else {
    }
    %c0 = arith.constant 0 : index
    %c0_1 = arith.constant 0 : index
    %c0_2 = arith.constant 0 : index
    %c0_3 = arith.constant 0 : index
    %3 = vector.load %arg3[%c0, %c0_1, %c0_2, %c0_3] : memref<2x1x2x128xf32, #tpu.memory_space<vmem>>, vector<2x1x2x128xf32>
    %4 = vector.shape_cast %3 : vector<2x1x2x128xf32> to vector<2x2x128xf32>
    %c0_4 = arith.constant 0 : index
    %c0_5 = arith.constant 0 : index
    %c0_6 = arith.constant 0 : index
    %c0_7 = arith.constant 0 : index
    %5 = vector.load %arg4[%c0_4, %c0_5, %c0_6, %c0_7] : memref<2x1x2x128xf32, #tpu.memory_space<vmem>>, vector<2x1x2x128xf32>
    %6 = vector.shape_cast %5 : vector<2x1x2x128xf32> to vector<2x2x128xf32>
    %7 = math.absf %4 : vector<2x2x128xf32>
    %cst = arith.constant 0.000000e+00 : f32
    %8 = vector.broadcast %cst : f32 to vector<2x2x128xf32>
    %9 = arith.subf %8, %7 : vector<2x2x128xf32>
    %10 = math.exp %9 : vector<2x2x128xf32>
    %cst_8 = arith.constant 0.000000e+00 : f32
    %11 = vector.broadcast %cst_8 : f32 to vector<2x2x128xf32>
    %12 = arith.cmpf oge, %4, %11 : vector<2x2x128xf32>
    %cst_9 = arith.constant 1.000000e+00 : f32
    %13 = vector.broadcast %cst_9 : f32 to vector<2x2x128xf32>
    %14 = arith.select %12, %13, %10 : vector<2x2x128xi1>, vector<2x2x128xf32>
    %cst_10 = arith.constant 1.000000e+00 : f32
    %15 = vector.broadcast %cst_10 : f32 to vector<2x2x128xf32>
    %16 = arith.addf %15, %10 : vector<2x2x128xf32>
    %17 = arith.divf %14, %16 : vector<2x2x128xf32>
    %cst_11 = arith.constant 0.000000e+00 : f32
    %18 = vector.broadcast %cst_11 : f32 to vector<2x2x128xf32>
    %19 = arith.maximumf %4, %18 : vector<2x2x128xf32>
    %20 = arith.mulf %4, %6 : vector<2x2x128xf32>
    %21 = arith.subf %19, %20 : vector<2x2x128xf32>
    %22 = math.log1p %10 : vector<2x2x128xf32>
    %23 = arith.addf %21, %22 : vector<2x2x128xf32>
    %c0_12 = arith.constant 0 : index
    %c0_13 = arith.constant 0 : index
    %c0_14 = arith.constant 0 : index
    %c0_15 = arith.constant 0 : index
    %24 = vector.load %arg5[%c0_12, %c0_13, %c0_14, %c0_15] : memref<1x1x4x128xf32, #tpu.memory_space<vmem>>, vector<1x1x4x128xf32>
    %25 = vector.shape_cast %24 : vector<1x1x4x128xf32> to vector<4x128xf32>
    %26 = arith.mulf %17, %6 : vector<2x2x128xf32>
    %cst_16 = arith.constant dense<0.000000e+00> : vector<128xf32>
    %27 = vector.multi_reduction <add>, %26, %cst_16 [0, 1] : vector<2x2x128xf32> to vector<128xf32>
    %28 = vector.shape_cast %27 : vector<128xf32> to vector<1x128xf32>
    %cst_17 = arith.constant dense<0.000000e+00> : vector<128xf32>
    %29 = vector.multi_reduction <add>, %17, %cst_17 [0, 1] : vector<2x2x128xf32> to vector<128xf32>
    %30 = vector.shape_cast %29 : vector<128xf32> to vector<1x128xf32>
    %cst_18 = arith.constant dense<0.000000e+00> : vector<128xf32>
    %31 = vector.multi_reduction <add>, %6, %cst_18 [0, 1] : vector<2x2x128xf32> to vector<128xf32>
    %32 = vector.shape_cast %31 : vector<128xf32> to vector<1x128xf32>
    %cst_19 = arith.constant dense<0.000000e+00> : vector<128xf32>
    %33 = vector.multi_reduction <add>, %23, %cst_19 [0, 1] : vector<2x2x128xf32> to vector<128xf32>
    %34 = vector.shape_cast %33 : vector<128xf32> to vector<1x128xf32>
    %35 = tpu.concatenate %28, %30, %32, %34 in 0 : vector<1x128xf32>, vector<1x128xf32>, vector<1x128xf32>, vector<1x128xf32> -> vector<4x128xf32>
    %36 = arith.addf %25, %35 : vector<4x128xf32>
    %c0_20 = arith.constant 0 : index
    %c0_21 = arith.constant 0 : index
    %c0_22 = arith.constant 0 : index
    %c0_23 = arith.constant 0 : index
    %37 = vector.load %arg5[%c0_20, %c0_21, %c0_22, %c0_23] : memref<1x1x4x128xf32, #tpu.memory_space<vmem>>, vector<1x1x4x128xf32>
    %38 = vector.shape_cast %37 : vector<1x1x4x128xf32> to vector<4x128xf32>
    %39 = vector.shape_cast %36 : vector<4x128xf32> to vector<1x1x4x128xf32>
    tpu.vector_store %arg5[%c0_20, %c0_21, %c0_22, %c0_23], %39 {strides = array<i32>} : memref<1x1x4x128xf32, #tpu.memory_space<vmem>>, vector<1x1x4x128xf32>,
    return
  }
  func.func @transform_0(%arg0: i32, %arg1: i32, %arg2: i32) -> (i32, i32, i32, i32) {
    %c1_i32 = arith.constant 1 : i32
    %0 = arith.muli %arg1, %c1_i32 : i32
    %1 = arith.addi %0, %arg2 : i32
    %c0_i32 = arith.constant 0 : i32
    %c0_i32_0 = arith.constant 0 : i32
    %c0_i32_1 = arith.constant 0 : i32
    return %c0_i32, %arg0, %1, %c0_i32_0 : i32, i32, i32, i32
  }
  func.func @transform_1(%arg0: i32, %arg1: i32, %arg2: i32) -> (i32, i32, i32, i32) {
    %c1_i32 = arith.constant 1 : i32
    %0 = arith.muli %arg1, %c1_i32 : i32
    %1 = arith.addi %0, %arg2 : i32
    %c0_i32 = arith.constant 0 : i32
    %c0_i32_0 = arith.constant 0 : i32
    %c0_i32_1 = arith.constant 0 : i32
    return %c0_i32, %arg0, %1, %c0_i32_0 : i32, i32, i32, i32
  }
  func.func @transform_2(%arg0: i32, %arg1: i32, %arg2: i32) -> (i32, i32, i32, i32) {
    %c0_i32 = arith.constant 0 : i32
    %c0_i32_0 = arith.constant 0 : i32
    %c0_i32_1 = arith.constant 0 : i32
    return %arg0, %arg1, %c0_i32, %c0_i32_0 : i32, i32, i32, i32
  }
}

</mosaic_0001>

<bundles_post_ra>
// kernel: tpu_custom_call.1
= control target key start
LH: loop header
LB: loop body
LE: loop exit
PB: predicated region body
PF: predicated region fallthrough
CT: control target
= control target key end

     0   :  { %s971_s0 = inlined_call_operand.hbm [shape: f32[2,4,2,128], index: 0, kind: input, shape index: {}]   ;;  %s972_s1 = inlined_call_operand.hbm [shape: f32[2,4,2,128], index: 1, kind: input, shape index: {}]   ;;  %s973_s2 = inlined_call_operand.hbm [shape: f32[4,1,4,128], index: 2, kind: output, shape index: {}]  }
   0x1   :  { %974 = sst [smem:[#allocation11_spill]] %s971_s0 }
   0x2   :  { %7 = vsyncpa [#allocation3], 0 }
   0x3   :  { %9 = vsyncpa [#allocation3 + $0x1], 0 }
   0x4   :  { %10 = vsyncpa [#allocation6], 0 }
   0x5   :  { %12 = vsyncpa [#allocation6 + $0x1], 0 }
   0x6   :  { %13 = vsyncpa [#allocation4], 0 }
   0x7   :  { %15 = vsyncpa [#allocation4 + $0x1], 0  ;;  %s757_s9 = smov 0   ;;  %s759_s10 = smov 0  }
   0x8   :  { %s761_s11 = smov 0   ;;  %s763_s12 = smov 0  }
   0x9   :  { %s765_s13 = smov 0   ;;  %s767_s14 = smov 0  }
   0xa LB: > { %s491_s15 = sadd.s32 4294967295, %s736_s14   ;;  %s492_s16 = sadd.s32 4294967294, %s736_s14   ;;  %s736_s14 = sphi %s767_s14, %s21_s14   ;;  %s732_s13 = sphi %s765_s13, %s991_s13   ;;  %s728_s12 = sphi %s763_s12, %s990_s12   ;;  %s724_s11 = sphi %s761_s11, %s989_s11   ;;  %s720_s10 = sphi %s759_s10, %s988_s10   ;;  %s716_s9 = sphi %s757_s9, %s987_s9  }
   0xb   : > { %s40_s17 = sadd.s32 1, %s732_s13  ;;  %s51_s18 = sadd.s32 1, %s724_s11 }
   0xc   : > { %p42_p0 = scmp.ge.s32.totalorder %s40_s17, 4  ;;  %p58_p1 = scmp.ne.s32.totalorder %s724_s11, %s720_s10 }
   0xd   : > { %p59_p2 = scmp.eq.s32.totalorder %s736_s14, 0  ;;  %p64_p3 = scmp.ne.s32.totalorder %s720_s10, %s716_s9 }
   0xe   : > { %s993_s17 = smov (%p42_p0, %s40_s17), 0  ;;  %p65_p5 = scmp.eq.s32.totalorder %s491_s15, 0 }
   0xf   : > { %p798_p4 = por %p59_p2, %p58_p1  ;;  %s46_s20 = ssub.s32 %s732_s13, %s993_s17 }
  0x10   : > { %p120_p6 = scmp.eq.s32.totalorder %s491_s15, 3  ;;  %p49_p7 = scmp.eq.s32.totalorder %s46_s20, 0 }
  0x11   : > { %p804_p8 = por %p65_p5, %p64_p3  ;;  %p126_p10 = scmp.eq.s32.totalorder %s492_s16, 3 }
  0x12   : > { %p808_p9 = por %p120_p6, %p58_p1  ;;  %p524_p12 = scmp.lt.s32.totalorder %s736_s14, 4 }
  0x13   : > { %s813_s23 = scalar_select %p49_p7, %s724_s11, %s51_s18  }
  0x14   : > { %p815_p11 = por %p126_p10, %p64_p3  ;;  %s821_s25 = sand.u32 1, %s724_s11  }
  0x15   : > { %s495_s26 = sshll.u32 %s821_s25, 2  ;;  %s496_s27 = sshll.u32 %s732_s13, 1 }
  0x16   : > { %s979_s0 = sld [smem:[#allocation11_spill]]  ;;  %s150_s3 = scalar_lea.vmem [#allocation2], %s495_s26 }
  0x17   : > { %s159_s4 = sshll.u32 %s150_s3, 4  ;;  %p830_p13 = pnand %p524_p12, %p798_p4  ;;  %s160_s4 = int_to_ptr.vmem [resolvable:$true] %s159_s4 }
  0x18   : > { %s147_s7 = scalar_lea.sflag [#allocation3], %s821_s25  ;;  %s738_s8 = smov 128  }
  0x19   : > { %s739_s15 = smov 32   ;;  %s740_s16 = smov 2  }
  0x1a   : > { %p499_p0 = scmp.ge.s32.totalorder %s736_s14, 1  ;;  %p190_p1 = scmp.lt.s32.totalorder %s736_s14, 5 }
  0x1b   : > { %s179_s19 = scalar_lea.hbm %s972_s1, %s496_s27  ;;  %s173_s29 = scalar_lea.vmem [#allocation5], %s495_s26 }
  0x1c   : > { %s156_s30 = scalar_lea.hbm %s979_s0, %s496_s27  ;;  %p191_p2 = pnand %p499_p0, %p190_p1 }
  0x1d   : > { %s157_s5 = sshll.u32 %s156_s30, 4  ;;  %s180_s28 = sshll.u32 %s179_s19, 4  ;;  %s158_s5 = int_to_ptr.hbm [resolvable:$true] %s157_s5  ;;  %s181_s28 = int_to_ptr.hbm [resolvable:$true] %s180_s28 }
  0x1e   : > { %516 = dma.hbm_to_vmem [thread:$0]  (!%p830_p13), %s158_s5, 64, %s160_s4, %s147_s7, %s738_s8, %s739_s15, %s740_s16  }
  0x1f   : > { %s182_s30 = sshll.u32 %s173_s29, 4  ;;  %s170_s3 = scalar_lea.sflag [#allocation6], %s821_s25  ;;  %s183_s30 = int_to_ptr.vmem [resolvable:$true] %s182_s30 }
  0x20   : > { %519 = dma.hbm_to_vmem [thread:$0]  (!%p830_p13), %s181_s28, 64, %s183_s30, %s170_s3, %s738_s8, %s739_s15, %s740_s16  }
  0x21   : > { %194 = sbr.rel (%p191_p2) target bundleno = 102 (0x66), region = 28  ;;  %s846_s0 = sand.u32 (!%p191_p2), 1, %s720_s10  }
  0x22   : > { %s500_s4 = sshll.u32 (!%p191_p2), %s846_s0, 2  ;;  %s197_s5 = scalar_lea.sflag (!%p191_p2), [#allocation3], %s846_s0 }
  0x23   : > { %s200_s7 = scalar_lea.vmem (!%p191_p2), [#allocation2], %s500_s4 }
  0x26   : > { %703 = dma.done.wait (%p804_p8), %s197_s5, 64  }
  0x27   : > { %705 = vsyncadd (%p804_p8), %s197_s5, 4294967232  ;;  %s207_s25 = scalar_lea.sflag [#allocation6], %s846_s0  ;;  %s210_s26 = scalar_lea.vmem [#allocation5], %s500_s4 }
  0x28   : > { %707 = dma.done.wait (%p804_p8), %s207_s25, 64  }
  0x29   : > { %709 = vsyncadd (%p804_p8), %s207_s25, 4294967232  ;;  %s859_s27 = scalar_lea.vmem [#allocation7], %s500_s4  ;;  %v741_v0 = vmov 0.0   ;;  %v862_v1 = vld [vmem:[%s200_s7] sm:$0x3]  ;;  %vm321_vm0 = vcmask 1041408  }
  0x2a   : > { %243 = vst [vmem:[%s859_s27] sm:$0xf] %v741_v0  ;;  %v864_v2 = vld [vmem:[%s200_s7 + $0x2] sm:$0x3]  ;;  %v248_v3 = vand.u32 2147483647, %v862_v1  ;;  %v292_v17 = vmax.f32 %v862_v1, 0.0 }
  0x2b   : > { %v249_v4 = vand.u32 2147483647, %v864_v2  ;;  %v872_v11 = vld [vmem:[%s210_s26] sm:$0x3]  ;;  %v875_v13 = vld [vmem:[%s210_s26 + $0x2] sm:$0x3] }
  0x2c   : > { %v250_v5 = vsub.f32 0.0, %v248_v3  ;;  %v294_v18 = vmul.f32 %v872_v11, %v862_v1  ;;  %v293_v19 = vmax.f32 %v864_v2, 0.0  ;;  %v295_v20 = vmul.f32 %v875_v13, %v864_v2  ;;  %s504_s21 = sshll.u32 %s728_s12, 2  ;;  %s379_s16 = sshll.u32 %s859_s27, 4  ;;  %s380_s16 = int_to_ptr.vmem [resolvable:$true] %s379_s16 }
  0x2d   : > { %v251_v6 = vsub.f32 0.0, %v249_v4  ;;  %v340_v22 = vsel %vm321_vm0, %v872_v11, 0.0  ;;  %v341_v23 = vsel %vm321_vm0, %v875_v13, 0.0  ;;  %vm256_vm1 = vcmp.ge.f32.partialorder %v862_v1, 0.0  ;;  %s377_s15 = scalar_lea.hbm %s973_s2, %s504_s21  ;;  %s366_s12 = scalar_lea.sflag [#allocation4], %s846_s0 }
  0x2e   : > { %v252_v7 = vmul.f32 1.442695, %v250_v5  ;;  %v296_v26 = vsub.f32 %v292_v17, %v294_v18  ;;  %v297_v30 = vsub.f32 %v293_v19, %v295_v20  ;;  %v342_v31 = vadd.f32 %v341_v23, %v340_v22  ;;  %s381_s18 = sshll.u32 %s377_s15, 4  ;;  %s670_s30 = scalar_lea.hbm %s973_s2, 16  ;;  %s382_s18 = int_to_ptr.hbm [resolvable:$true] %s381_s18 }
  0x2f   : > { %v254_v8 = vmul.f32 1.442695, %v251_v6  ;;  %vm257_vm8 = vcmp.ge.f32.partialorder %v864_v2, 0.0  ;;  %vm358_vm13 = vcmask 1040384   ;;  %vm361_vm14 = vcmask 1042432   ;;  %s664_s20 = sshra.s32 %s382_s18, 4  ;;  %s665_s20 = int_to_ptr.hbm [resolvable:$true] %s664_s20 }
  0x30   : > { %578 = vpow2.f32 %v252_v7  ;;  %v343_v50 = vrot.slane %v342_v31, 4  ;;  %s666_s19 = scalar_lea.hbm %s665_s20, 4  ;;  %p671_p6 = scmp.lt.s32.totalorder %s665_s20, %s973_s2 }
  0x31   : > { %580 = vpow2.f32 %v254_v8  ;;  %p667_p3 = scmp.ne.s32.totalorder %s665_s20, %s666_s19  ;;  %p672_p7 = scmp.lt.s32.totalorder %s670_s30, %s666_s19 }
  0x32   : > { %v344_v8 = vadd.f32 %v343_v50, %v342_v31 }
  0x33   : > { %p668_p4 = pnand %p667_p3, %p808_p9  ;;  %p673_p8 = por %p672_p7, %p671_p6 }
  0x34   : > { %v345_v19 = vrot.slane %v344_v8, 2 }
  0x35   : > { %p669_p5 = pneg %p668_p4 }
  0x36   : > { %v868_v9 = vpop.eup %578 }
  0x37   : > { %v870_v10 = vpop.eup %580  ;;  %v260_v12 = vadd.f32 1.0, %v868_v9  ;;  %v301_v15 = vmul.f32 -0.5, %v868_v9  ;;  %v304_v24 = vand.u32 2147483647, %v868_v9  ;;  %v258_v59 = vsel %vm256_vm1, 1.0, %v868_v9  ;;  %p674_p10 = pnand %p673_p8, %p669_p5 }
  0x38   : > { %v261_v14 = vadd.f32 1.0, %v870_v10  ;;  %v310_v16 = vmul.f32 -0.5, %v870_v10  ;;  %v313_v27 = vand.u32 2147483647, %v870_v10  ;;  %v259_v62 = vsel %vm257_vm8, 1.0, %v870_v10 }
  0x39   : > { %582 = vrcp.f32 %v260_v12  ;;  %v302_v21 = vadd.f32 1.0, %v301_v15  ;;  %vm267_vm2 = vweird.f32 %v260_v12  ;;  %v271_v29 = vand.u32 2147483647, %v260_v12 }
  0x3a   : > { %584 = vrcp.f32 %v261_v14  ;;  %v311_v25 = vadd.f32 1.0, %v310_v16  ;;  %v273_v34 = vand.u32 2147483648, %v260_v12  ;;  %vm282_vm3 = vweird.f32 %v261_v14 }
  0x3b   : > { %586 = vlog2.f32 %v260_v12  ;;  %v303_v35 = vmul.f32 %v868_v9, %v302_v21  ;;  %v288_v38 = vand.u32 2147483648, %v261_v14  ;;  %vm894_vm4 = vcmp.lt.f32.partialorder %v304_v24, 0.0004427343 }
  0x3c   : > { %588 = vlog2.f32 %v261_v14  ;;  %v312_v40 = vmul.f32 %v870_v10, %v311_v25  ;;  %vm899_vm6 = vcmp.lt.f32.partialorder %v313_v27, 0.0004427343  ;;  %v286_v46 = vand.u32 2147483647, %v261_v14 }
  0x3d   : > { %v274_v52 = vor.u32 1.1754944e-38, %v273_v34  ;;  %vm272_vm10 = vcmp.eq.f32.partialorder %v271_v29, 8.507059e+37  ;;  %v289_v57 = vor.u32 1.1754944e-38, %v288_v38  ;;  %v318_v38 = vld [vmem:[%s859_s27] sm:$0xf] }
  0x3e   : > { %vm287_vm12 = vcmp.eq.f32.partialorder %v286_v46, 8.507059e+37 }
  0x3f   : > { %v583_v28 = vpop.eup %582 }
  0x40   : > { %v585_v32 = vpop.eup %584  ;;  %v263_v33 = vmul.f32 %v583_v28, %v260_v12  ;;  %vm268_vm5 = vweird.f32 %v583_v28 }
  0x41   : > { %v587_v36 = vpop.eup %586  ;;  %v278_v37 = vmul.f32 %v585_v32, %v261_v14  ;;  %vm283_vm7 = vweird.f32 %v585_v32  ;;  %vm907_vm9 = vmor %vm267_vm2, %vm268_vm5 }
  0x42   : > { %v589_v41 = vpop.eup %588  ;;  %v264_v42 = vsub.f32 1.0, %v263_v33  ;;  %v300_v43 = vmul.f32 0.6931472, %v587_v36  ;;  %vm284_vm11 = vmor %vm282_vm3, %vm283_vm7 }
  0x43   : > { %v279_v45 = vsub.f32 1.0, %v278_v37  ;;  %v309_v47 = vmul.f32 0.6931472, %v589_v41 }
  0x44   : > { %v265_v48 = vmul.f32 %v583_v28, %v264_v42  ;;  %v306_v49 = vsel %vm894_vm4, %v303_v35, %v300_v43 }
  0x45   : > { %v280_v53 = vmul.f32 %v585_v32, %v279_v45  ;;  %v315_v54 = vsel %vm899_vm6, %v312_v40, %v309_v47  ;;  %v316_v55 = vadd.f32 %v306_v49, %v296_v26 }
  0x46   : > { %v266_v56 = vadd.f32 %v583_v28, %v265_v48  ;;  %v317_v58 = vadd.f32 %v315_v54, %v297_v30 }
  0x47   : > { %v281_v60 = vadd.f32 %v585_v32, %v280_v53  ;;  %v349_v61 = vsel %vm321_vm0, %v316_v55, 0.0 }
  0x48   : > { %v270_v63 = vsel %vm907_vm9, %v583_v28, %v266_v56  ;;  %v350_v0 = vsel %vm321_vm0, %v317_v58, 0.0 }
  0x49   : > { %v275_v3 = vsel %vm272_vm10, %v274_v52, %v270_v63  ;;  %v285_v4 = vsel %vm284_vm11, %v585_v32, %v281_v60  ;;  %v351_v5 = vadd.f32 %v350_v0, %v349_v61 }
  0x4a   : > { %v276_v6 = vmul.f32 %v275_v3, %v258_v59  ;;  %v290_v7 = vsel %vm287_vm12, %v289_v57, %v285_v4 }
  0x4b   : > { %v291_v1 = vmul.f32 %v290_v7, %v259_v62  ;;  %v352_v9 = vrot.slane %v351_v5, 4 }
  0x4c   : > { %v319_v12 = vmul.f32 %v276_v6, %v872_v11  ;;  %v331_v14 = vsel %vm321_vm0, %v276_v6, 0.0  ;;  %v346_v11 = vadd.f32 %v345_v19, %v344_v8 }
  0x4d   : > { %v320_v2 = vmul.f32 %v291_v1, %v875_v13  ;;  %v332_v10 = vsel %vm321_vm0, %v291_v1, 0.0  ;;  %v353_v15 = vadd.f32 %v352_v9, %v351_v5 }
  0x4e   : > { %v322_v16 = vsel %vm321_vm0, %v319_v12, 0.0  ;;  %v333_v17 = vadd.f32 %v332_v10, %v331_v14  ;;  %v347_v29 = vrot.slane %v346_v11, 1 }
  0x4f   : > { %v323_v18 = vsel %vm321_vm0, %v320_v2, 0.0  ;;  %v354_v22 = vrot.slane %v353_v15, 2 }
  0x50   : > { %v324_v20 = vadd.f32 %v323_v18, %v322_v16  ;;  %v334_v21 = vrot.slane %v333_v17, 4  ;;  %v348_v35 = vadd.f32 %v347_v29, %v346_v11 }
  0x51   : > { %v355_v27 = vadd.f32 %v354_v22, %v353_v15 }
  0x52   : > { %v325_v23 = vrot.slane %v324_v20, 4  ;;  %v335_v24 = vadd.f32 %v334_v21, %v333_v17 }
  0x53   : > { %v356_v32 = vrot.slane %v355_v27, 1 }
  0x54   : > { %v326_v25 = vadd.f32 %v325_v23, %v324_v20  ;;  %v336_v26 = vrot.slane %v335_v24, 2 }
  0x55   : > { %v357_v37 = vadd.f32 %v356_v32, %v355_v27 }
  0x56   : > { %v327_v13 = vrot.slane %v326_v25, 2  ;;  %v337_v28 = vadd.f32 %v336_v26, %v335_v24 }
  0x58   : > { %v328_v30 = vadd.f32 %v327_v13, %v326_v25  ;;  %v338_v31 = vrot.slane %v337_v28, 1 }
  0x5a   : > { %v329_v33 = vrot.slane %v328_v30, 1  ;;  %v339_v34 = vadd.f32 %v338_v31, %v337_v28 }
  0x5c   : > { %v330_v36 = vadd.f32 %v329_v33, %v328_v30 }
  0x5e   : > { %v359_v39 = vsel %vm358_vm13, %v330_v36, %v339_v34 }
  0x5f   : > { %v360_v40 = vsel %vm321_vm0, %v359_v39, %v348_v35 }
  0x60   : > { %v362_v41 = vsel %vm361_vm14, %v360_v40, %v357_v37 }
  0x61   : > { %v363_v42 = vadd.f32 %v362_v41, %v318_v38 }
  0x63   : > { %364 = vst [vmem:[%s859_s27] sm:$0xf] %v363_v42 }
  0x64   : > { %677 = shalt.err (!%p674_p10)
}
  0x65   : > { %511 = dma.vmem_to_hbm [thread:$0]  (%p808_p9), %s380_s16, 64, %s382_s18, %s366_s12  }
  0x66 PF: > { %p525_p12 = scmp.ge.s32.totalorder %s736_s14, 2  ;;  %s393_s0 = sand.u32 1, %s716_s9  }
  0x67   : > { %s394_s5 = scalar_lea.sflag [#allocation4], %s393_s0 }
  0x68   : > { %p521_p13 = pnand %p525_p12, %p815_p11 }
  0x6a   : > { %p522_p0 = pneg %p521_p13 }
  0x6c   : > { %711 = dma.done.wait (%p522_p0), %s394_s5, 64  }
  0x6d   : > { %713 = vsyncadd (%p522_p0), %s394_s5, 4294967232  ;;  %s21_s14 = sadd.s32 1, %s736_s14   ;;  %s987_s9 = smov %s720_s10 }
  0x6e   : > { %p18_p1 = scmp.ge.s32.totalorder %s21_s14, 6   ;;  %s988_s10 = smov %s724_s11 }
  0x6f   : > { %s989_s11 = smov %s813_s23  ;;  %s990_s12 = smov %s732_s13 }
  0x70   : > { %s991_s13 = smov %s993_s17  ;;  %20 = sbr.rel (!%p18_p1) target bundleno = 10 (0xa), region = 90 }
  0x75   :  { %400 = vsyncpa [#allocation3], 1 }
  0x76   :  { %402 = vsyncpa [#allocation3 + $0x1], 1 }
  0x77   :  { %403 = vsyncpa [#allocation6], 1 }
  0x78   :  { %405 = vsyncpa [#allocation6 + $0x1], 1 }
  0x79   :  { %406 = vsyncpa [#allocation4], 1 }
  0x7a   :  { %408 = vsyncpa [#allocation4 + $0x1], 1 }

</bundles_post_ra>
